<compile_context>
chip_gen: v5e
topology: v5e:2x2
jax: 0.10.0
libtpu: 0.0.40
codegen_flags: <defaults>
</compile_context>

<pallas_src>
import functools

import jax
import jax.numpy as jnp
from jax.experimental import pallas as pl
from jax.experimental.pallas import tpu as pltpu

BN_EPS = 1e-5
_VMEM_TILE_BUDGET = 40 * 1024 * 1024   # tile-picking budget (headroom under v7x 64 MiB/TC)
_VMEM_LIMIT_BYTES = 48 * 1024 * 1024   # scoped VMEM limit (safe on v5e/v6e/v7x)


def _conv_stats_kernel(x_ref, b_ref, conv_ref, stats_ref):
    """Pass 1: one K-fused MXU matmul per tile -> f32 conv rows + BN stat partials.

    x_ref    : (hb, K*Wp*Cin)     H-im2col'd input rows (MXU operand dtype)
    b_ref    : (K*Wp*Cin, lanes)  banded block-Toeplitz weights, all KH taps fused
    conv_ref : (hb, lanes)        f32 conv rows, written exactly once (no recompute)
    stats_ref: (2, lanes)         per-batch [sum; sum_sq], resident across the j axis
    """
    j = pl.program_id(1)
    acc = jnp.dot(x_ref[...], b_ref[...], preferred_element_type=jnp.float32)
    conv_ref[...] = acc
    part = jnp.concatenate(
        [jnp.sum(acc, axis=0, keepdims=True),
         jnp.sum(acc * acc, axis=0, keepdims=True)], axis=0)      # (2, lanes) f32

    @pl.when(j == 0)
    def _():
        stats_ref[...] = part

    @pl.when(j != 0)
    def _():
        stats_ref[...] = stats_ref[...] + part


def _bn_relu_kernel(conv_ref, scale_ref, shift_ref, out_ref):
    """Pass 2: pure elementwise folded-BN FMA + ReLU over the stored conv rows."""
    y = conv_ref[...] * scale_ref[...] + shift_ref[...]
    out_ref[...] = jnp.maximum(y, 0.0).astype(out_ref.dtype)


def _row_block(nrows, per_row_bytes, fixed_bytes,
               vmem_budget=_VMEM_TILE_BUDGET, max_rows=512):
    """Largest multiple-of-8 divisor of nrows (<= max_rows) fitting the VMEM budget."""
    if nrows % 8 != 0:
        return nrows
    best = 8
    cand = 8
    while cand <= min(nrows, max_rows):
        if nrows % cand == 0 and fixed_bytes + cand * per_row_bytes <= vmem_budget:
            best = cand
        cand += 8
    return best


def dilate_conv_forward(x_nchw, weight, bias, gamma, beta, *,
                        kernel_size=3, dilation=1, padding=1,
                        matmul_dtype=None):
    """PyTorch-compatible forward. x_nchw: (N, Cin, H, W); weight: (Cout, Cin, K, K).

    matmul_dtype: dtype of the MXU operands (default: input dtype).  Pass
    jnp.bfloat16 for the native bf16 MXU path when reduced precision is OK.
    """
    del bias  # exactly cancelled by training-mode BatchNorm mean subtraction
    N, Cin, H, W = x_nchw.shape
    Cout = weight.shape[0]
    K = kernel_size
    Hp, Wp = H + 2 * padding, W + 2 * padding
    Hout = Hp - dilation * (K - 1)
    Wout = Wp - dilation * (K - 1)
    lanes = Wout * Cout                       # = 128 for the module's shapes
    out_dtype = x_nchw.dtype
    mm_dtype = out_dtype if matmul_dtype is None else matmul_dtype

    # ---- boundary glue: NCHW -> NHWC, zero-pad, flatten (Wp, Cin) -> Wp*Cin, then
    # H-im2col so each tile is a single K = 3*Wp*Cin matmul (no in-kernel H slicing,
    # no whole-slab input block, no halo windows needed).
    x = jnp.transpose(x_nchw, (0, 2, 3, 1)).astype(mm_dtype)
    xpad = jnp.pad(x, ((0, 0), (padding, padding), (padding, padding), (0, 0)))
    xflat = xpad.reshape(N, Hp, Wp * Cin)
    xcat = jnp.concatenate(
        [xflat[:, kh * dilation: kh * dilation + Hout, :] for kh in range(K)],
        axis=-1)                              # (N, Hout, K*Wp*Cin)
    Kdim = K * Wp * Cin

    # ---- banded (block-Toeplitz) weights, all KH taps fused along the contraction:
    #   Bcat[kh*Wp*Cin + w'*Cin + ci, w*Cout + co]
    #     = sum_{kw : w' == w + kw*dilation} weight[co, ci, kh, kw]
    w_hwio = jnp.transpose(weight, (2, 3, 1, 0)).astype(mm_dtype)   # (KH, KW, Cin, Cout)
    wprime = jnp.arange(Wp)[:, None]
    wcol = jnp.arange(Wout)[None, :]
    taps = []
    for kh in range(K):
        bk = jnp.zeros((Wp * Cin, lanes), mm_dtype)
        for kw in range(K):
            sel = (wprime == wcol + kw * dilation).astype(mm_dtype)  # (Wp, Wout)
            bk = bk + jnp.einsum("pw,ic->piwc", sel, w_hwio[kh, kw]).reshape(
                Wp * Cin, lanes)
        taps.append(bk)
    b_cat = jnp.concatenate(taps, axis=0)     # (Kdim, lanes)

    # ---- pass-1 tile sizing from the VMEM budget (double-buffered x tile and conv
    # tile per row; b_cat + stats block are fixed residents).
    x_isize = jnp.dtype(mm_dtype).itemsize
    per_row1 = 2 * Kdim * x_isize + 2 * lanes * 4
    fixed1 = 2 * Kdim * lanes * x_isize + 2 * 2 * lanes * 4
    hb = _row_block(Hout, per_row1, fixed1)
    n_hb = Hout // hb

    cparams1 = pltpu.CompilerParams(
        dimension_semantics=("parallel", "arbitrary"),   # j carries the stats accumulator
        vmem_limit_bytes=_VMEM_LIMIT_BYTES)

    # ---- pass 1: conv rows (written once) + per-batch BN stat partials ----
    conv_f32, stats = pl.pallas_call(
        _conv_stats_kernel,
        out_shape=(jax.ShapeDtypeStruct((N, Hout, lanes), jnp.float32),
                   jax.ShapeDtypeStruct((N, 2, lanes), jnp.float32)),
        grid=(N, n_hb),
        in_specs=[
            pl.BlockSpec((None, hb, Kdim), lambda n, j: (n, j, 0)),
            # TODO(synk): at production sizes mark this constant block
            # pipeline_mode=pl.Buffered(1) to reclaim the redundant second buffer.
            pl.BlockSpec((Kdim, lanes), lambda n, j: (0, 0)),
        ],
        out_specs=(pl.BlockSpec((None, hb, lanes), lambda n, j: (n, j, 0)),
                   pl.BlockSpec((None, 2, lanes), lambda n, j: (n, 0, 0))),
        compiler_params=cparams1,
    )(xcat, b_cat)

    # ---- tiny per-channel reduction + BN folding (f32 JAX glue) ----
    # NOTE: E[x^2]-E[x]^2 can cancel catastrophically if |mean| >> std; use a
    # shifted sum-of-squares if activation scales ever make this an issue.
    sums = stats[:, 0, :].sum(axis=0).reshape(Wout, Cout).sum(axis=0)
    sumsq = stats[:, 1, :].sum(axis=0).reshape(Wout, Cout).sum(axis=0)
    cnt = float(N * Hout * Wout)
    mean = sums / cnt
    var = jnp.maximum(sumsq / cnt - mean * mean, 0.0)     # biased (training-mode BN)
    inv_std = jax.lax.rsqrt(var + BN_EPS)
    scale = gamma.astype(jnp.float32) * inv_std
    shift = beta.astype(jnp.float32) - mean * scale
    scale_l = jnp.tile(scale, Wout).reshape(1, lanes)     # lane layout: w*Cout + co
    shift_l = jnp.tile(shift, Wout).reshape(1, lanes)

    # ---- pass 2: purely elementwise scale/shift + ReLU over stored conv rows ----
    R = N * Hout
    conv_rows = conv_f32.reshape(R, lanes)
    o_isize = jnp.dtype(out_dtype).itemsize
    per_row2 = 2 * lanes * 4 + 2 * lanes * o_isize
    rb = _row_block(R, per_row2, 4 * 2 * lanes * 4)

    out_rows = pl.pallas_call(
        _bn_relu_kernel,
        out_shape=jax.ShapeDtypeStruct((R, lanes), out_dtype),
        grid=(R // rb,),
        in_specs=[pl.BlockSpec((rb, lanes), lambda i: (i, 0)),
                  pl.BlockSpec((1, lanes), lambda i: (0, 0)),
                  pl.BlockSpec((1, lanes), lambda i: (0, 0))],
        out_specs=pl.BlockSpec((rb, lanes), lambda i: (i, 0)),
        compiler_params=pltpu.CompilerParams(
            dimension_semantics=("parallel",),
            vmem_limit_bytes=_VMEM_LIMIT_BYTES),
    )(conv_rows, scale_l, shift_l)

    out = out_rows.reshape(N, Hout, Wout, Cout)
    return jnp.transpose(out, (0, 3, 1, 2))               # back to NCHW
    # TODO(synk): BatchNorm running_mean / running_var state updates (module side
    # effect) are not reproduced; only the training-mode forward output is computed.


def _reference(x_nchw, weight, bias, gamma, beta, *, dilation=1, padding=1):
    """Pure-JAX reference (training-mode BN) for correctness checking."""
    y = jax.lax.conv_general_dilated(
        x_nchw, weight, window_strides=(1, 1),
        padding=((padding, padding), (padding, padding)),
        rhs_dilation=(dilation, dilation),
        dimension_numbers=("NCHW", "OIHW", "NCHW"))
    y = y + bias[None, :, None, None]
    mean = jnp.mean(y, axis=(0, 2, 3), keepdims=True)
    var = jnp.var(y, axis=(0, 2, 3), keepdims=True)       # biased
    y = (y - mean) * jax.lax.rsqrt(var + BN_EPS)
    y = y * gamma[None, :, None, None] + beta[None, :, None, None]
    return jnp.maximum(y, 0.0)


if __name__ == "__main__":
    key = jax.random.PRNGKey(0)
    k_x, k_w, k_b = jax.random.split(key, 3)

    # Small shapes consistent with the module: dilate_conv(in_ch=4, out_ch=8)
    N, Cin, Cout, H, W = 2, 4, 8, 16, 16
    ksize, dil, pad = 3, 1, 1

    x = jax.random.normal(k_x, (N, Cin, H, W), jnp.float32)

    # Deterministic parameter init (PyTorch-style uniform for conv, BN defaults).
    fan_in = Cin * ksize * ksize
    bound = 1.0 / (fan_in ** 0.5)
    weight = jax.random.uniform(k_w, (Cout, Cin, ksize, ksize), jnp.float32,
                                -bound, bound)
    bias = jax.random.uniform(k_b, (Cout,), jnp.float32, -bound, bound)
    gamma = jnp.ones((Cout,), jnp.float32)
    beta = jnp.zeros((Cout,), jnp.float32)

    out = dilate_conv_forward(x, weight, bias, gamma, beta,
                              kernel_size=ksize, dilation=dil, padding=pad)
    out = jax.block_until_ready(out)

    ref = _reference(x, weight, bias, gamma, beta, dilation=dil, padding=pad)
    assert out.shape == (N, Cout, H, W)
    assert jnp.allclose(out, ref, atol=1e-4, rtol=1e-4), \
        f"max abs err {jnp.max(jnp.abs(out - ref))}"

    print("KERNEL_OK")
</pallas_src>

<mosaic_0001>
module attributes {stable_mosaic.version = 11 : i64} {
  func.func @_conv_stats_kernel(%arg0: i32, %arg1: i32, %arg2: memref<1x16x216xf32, #tpu.memory_space<vmem>>, %arg3: memref<216x128xf32, #tpu.memory_space<vmem>>, %arg4: memref<1x16x128xf32, #tpu.memory_space<vmem>>, %arg5: memref<1x2x128xf32, #tpu.memory_space<vmem>>) attributes {dimension_semantics = [#tpu.dimension_semantics<parallel>, #tpu.dimension_semantics<arbitrary>], iteration_bounds = array<i64: 2, 1>, scalar_prefetch = 0 : i64, scratch_operands = 0 : i64, tpu.core_type = #tpu.core_type<tc>, window_params = [{transform_indices = @transform_0, window_bounds = array<i64: 1, 16, 216>}, {pipeline_mode = #tpu.pipeline_mode<synchronous>, transform_indices = @transform_1, window_bounds = array<i64: 216, 128>}, {transform_indices = @transform_2, window_bounds = array<i64: 1, 16, 128>}, {transform_indices = @transform_3, window_bounds = array<i64: 1, 2, 128>}]} {
    %c0 = arith.constant 0 : index
    %c0_0 = arith.constant 0 : index
    %c0_1 = arith.constant 0 : index
    %0 = vector.load %arg2[%c0, %c0_0, %c0_1] : memref<1x16x216xf32, #tpu.memory_space<vmem>>, vector<1x16x216xf32>
    %1 = vector.shape_cast %0 : vector<1x16x216xf32> to vector<16x216xf32>
    %c0_2 = arith.constant 0 : index
    %c0_3 = arith.constant 0 : index
    %2 = vector.load %arg3[%c0_2, %c0_3] : memref<216x128xf32, #tpu.memory_space<vmem>>, vector<216x128xf32>
    %cst = arith.constant dense<0.000000e+00> : vector<16x128xf32>
    %3 = tpu.matmul %1, %2, %cst {dimension_numbers = #tpu.dot_dimension_numbers<[1], [0], [0], [1], [0, 0, 1, 1], [], []>} : vector<16x216xf32>, vector<216x128xf32>, vector<16x128xf32> -> vector<16x128xf32>
    %c0_4 = arith.constant 0 : index
    %c0_5 = arith.constant 0 : index
    %c0_6 = arith.constant 0 : index
    %4 = vector.load %arg4[%c0_4, %c0_5, %c0_6] : memref<1x16x128xf32, #tpu.memory_space<vmem>>, vector<1x16x128xf32>
    %5 = vector.shape_cast %4 : vector<1x16x128xf32> to vector<16x128xf32>
    %6 = vector.shape_cast %3 : vector<16x128xf32> to vector<1x16x128xf32>
    tpu.vector_store %arg4[%c0_4, %c0_5, %c0_6], %6 {strides = array<i32>} : memref<1x16x128xf32, #tpu.memory_space<vmem>>, vector<1x16x128xf32>,
    %cst_7 = arith.constant dense<0.000000e+00> : vector<128xf32>
    %7 = vector.multi_reduction <add>, %3, %cst_7 [0] : vector<16x128xf32> to vector<128xf32>
    %8 = vector.shape_cast %7 : vector<128xf32> to vector<1x128xf32>
    %9 = arith.mulf %3, %3 : vector<16x128xf32>
    %cst_8 = arith.constant dense<0.000000e+00> : vector<128xf32>
    %10 = vector.multi_reduction <add>, %9, %cst_8 [0] : vector<16x128xf32> to vector<128xf32>
    %11 = vector.shape_cast %10 : vector<128xf32> to vector<1x128xf32>
    %12 = tpu.concatenate %8, %11 in 0 : vector<1x128xf32>, vector<1x128xf32> -> vector<2x128xf32>
    %c0_i32 = arith.constant 0 : i32
    %13 = arith.cmpi eq, %arg1, %c0_i32 : i32
    %14 = arith.extui %13 : i1 to i32
    %c0_i32_9 = arith.constant 0 : i32
    %15 = arith.cmpi ne, %14, %c0_i32_9 : i32
    scf.if %15 {
      %c0_12 = arith.constant 0 : index
      %c0_13 = arith.constant 0 : index
      %c0_14 = arith.constant 0 : index
      %19 = vector.load %arg5[%c0_12, %c0_13, %c0_14] : memref<1x2x128xf32, #tpu.memory_space<vmem>>, vector<1x2x128xf32>
      %20 = vector.shape_cast %19 : vector<1x2x128xf32> to vector<2x128xf32>
      %21 = vector.shape_cast %12 : vector<2x128xf32> to vector<1x2x128xf32>
      tpu.vector_store %arg5[%c0_12, %c0_13, %c0_14], %21 {strides = array<i32>} : memref<1x2x128xf32, #tpu.memory_space<vmem>>, vector<1x2x128xf32>,
    } else {
    }
    %c0_i32_10 = arith.constant 0 : i32
    %16 = arith.cmpi ne, %arg1, %c0_i32_10 : i32
    %17 = arith.extui %16 : i1 to i32
    %c0_i32_11 = arith.constant 0 : i32
    %18 = arith.cmpi ne, %17, %c0_i32_11 : i32
    scf.if %18 {
      %c0_12 = arith.constant 0 : index
      %c0_13 = arith.constant 0 : index
      %c0_14 = arith.constant 0 : index
      %19 = vector.load %arg5[%c0_12, %c0_13, %c0_14] : memref<1x2x128xf32, #tpu.memory_space<vmem>>, vector<1x2x128xf32>
      %20 = vector.shape_cast %19 : vector<1x2x128xf32> to vector<2x128xf32>
      %21 = arith.addf %20, %12 : vector<2x128xf32>
      %c0_15 = arith.constant 0 : index
      %c0_16 = arith.constant 0 : index
      %c0_17 = arith.constant 0 : index
      %22 = vector.load %arg5[%c0_15, %c0_16, %c0_17] : memref<1x2x128xf32, #tpu.memory_space<vmem>>, vector<1x2x128xf32>
      %23 = vector.shape_cast %22 : vector<1x2x128xf32> to vector<2x128xf32>
      %24 = vector.shape_cast %21 : vector<2x128xf32> to vector<1x2x128xf32>
      tpu.vector_store %arg5[%c0_15, %c0_16, %c0_17], %24 {strides = array<i32>} : memref<1x2x128xf32, #tpu.memory_space<vmem>>, vector<1x2x128xf32>,
    } else {
    }
    return
  }
  func.func @transform_0(%arg0: i32, %arg1: i32) -> (i32, i32, i32) {
    %c0_i32 = arith.constant 0 : i32
    %c0_i32_0 = arith.constant 0 : i32
    return %arg0, %arg1, %c0_i32 : i32, i32, i32
  }
  func.func @transform_1(%arg0: i32, %arg1: i32) -> (i32, i32) {
    %c0_i32 = arith.constant 0 : i32
    %c0_i32_0 = arith.constant 0 : i32
    %c0_i32_1 = arith.constant 0 : i32
    return %c0_i32, %c0_i32_0 : i32, i32
  }
  func.func @transform_2(%arg0: i32, %arg1: i32) -> (i32, i32, i32) {
    %c0_i32 = arith.constant 0 : i32
    %c0_i32_0 = arith.constant 0 : i32
    return %arg0, %arg1, %c0_i32 : i32, i32, i32
  }
  func.func @transform_3(%arg0: i32, %arg1: i32) -> (i32, i32, i32) {
    %c0_i32 = arith.constant 0 : i32
    %c0_i32_0 = arith.constant 0 : i32
    %c0_i32_1 = arith.constant 0 : i32
    return %arg0, %c0_i32, %c0_i32_0 : i32, i32, i32
  }
}

</mosaic_0001>

<bundles_post_ra>
// kernel: tpu_custom_call.1
= control target key start
LH: loop header
LB: loop body
LE: loop exit
PB: predicated region body
PF: predicated region fallthrough
CT: control target
= control target key end

     0   :  { %s1028_s0 = inlined_call_operand.hbm [shape: f32[2,16,216], index: 0, kind: input, shape index: {}]   ;;  %s1029_s1 = inlined_call_operand.hbm [shape: f32[216,128], index: 1, kind: input, shape index: {}]   ;;  %s1030_s2 = inlined_call_operand.hbm [shape: f32[2,16,128], index: 2, kind: output, shape index: {0}]   ;;  %s1031_s3 = inlined_call_operand.hbm [shape: f32[2,2,128], index: 3, kind: output, shape index: {1}]  }
   0x1   :  { %1032 = sst [smem:[#allocation14_spill]] %s1029_s1 }
   0x2   :  { %9 = vsyncpa [#allocation3], 0 }
   0x3   :  { %11 = vsyncpa [#allocation3 + $0x1], 0 }
   0x4   :  { %12 = vsyncpa [#allocation6], 0 }
   0x5   :  { %13 = vsyncpa [#allocation4], 0 }
   0x6   :  { %15 = vsyncpa [#allocation4 + $0x1], 0 }
   0x7   :  { %16 = vsyncpa [#allocation9], 0 }
   0x8   :  { %18 = vsyncpa [#allocation9 + $0x1], 0  ;;  %s854_s12 = smov 0   ;;  %s856_s13 = smov 0  }
   0x9   :  { %s858_s14 = smov 0   ;;  %s860_s15 = smov 0  }
   0xa   :  { %s862_s16 = smov 0   ;;  %s864_s17 = smov 0  }
   0xb LB: > { %s523_s18 = sadd.s32 4294967295, %s825_s17   ;;  %s524_s19 = sadd.s32 4294967294, %s825_s17   ;;  %s825_s17 = sphi %s864_s17, %s24_s17   ;;  %s821_s16 = sphi %s862_s16, %s1045_s16   ;;  %s817_s15 = sphi %s860_s15, %s1044_s15   ;;  %s813_s14 = sphi %s858_s14, %s1043_s14   ;;  %s809_s13 = sphi %s856_s13, %s1042_s13   ;;  %s805_s12 = sphi %s854_s12, %s1041_s12  }
   0xc   : > { %p58_p0 = scmp.ne.s32.totalorder %s809_s13, %s805_s12  ;;  %p888_p1 = scmp.eq.s32.totalorder %s523_s18, 0 }
   0xd   : > { %p892_p2 = scmp.eq.s32.totalorder %s523_s18, 1  ;;  %p111_p3 = scmp.eq.s32.totalorder %s524_s19, 1 }
   0xe   : > { %p898_p4 = por %p888_p1, %p58_p0  ;;  %p525_p5 = scmp.ge.s32.totalorder %s825_s17, 1 }
   0xf   : > { %p903_p6 = por %p111_p3, %p58_p0  ;;  %p144_p7 = scmp.lt.s32.totalorder %s825_s17, 3 }
  0x10   : > { %s1037_s1 = sld [smem:[#allocation14_spill]]  ;;  %s827_s28 = smov [#allocation5]  }
  0x11   : > { %p911_p8 = pnand %p525_p5, %p144_p7  ;;  %s157_s29 = sshll.u32 %s827_s28, 4  ;;  %s158_s29 = int_to_ptr.vmem [resolvable:$true] %s157_s29 }
  0x12   : > { %p527_p11 = scmp.ge.s32.totalorder %s825_s17, 2  ;;  %s828_s30 = smov 128  }
  0x13   : > { %p573_p9 = pneg %p911_p8  ;;  %s829_s4 = smov 8  }
  0x14   : > { %s36_s5 = sadd.s32 1, %s821_s16  ;;  %s45_s6 = sadd.s32 1, %s813_s14 }
  0x15   : > { %p574_p10 = pnand %p573_p9, %p888_p1  ;;  %p38_p12 = scmp.ge.s32.totalorder %s36_s5, 2 }
  0x16   : > { %s155_s26 = sshll.u32 %s1037_s1, 4  ;;  %p52_p13 = scmp.ne.s32.totalorder %s813_s14, %s809_s13  ;;  %s156_s26 = int_to_ptr.hbm [resolvable:$true] %s155_s26 }
  0x17   : > { %576 = dma.hbm_to_vmem [thread:$0]  (!%p574_p10), %s156_s26, 3456, %s158_s29, [#allocation6], %s828_s30, %s828_s30, %s829_s4  }
  0x18   : > { %p53_p0 = scmp.eq.s32.totalorder %s825_s17, 0  ;;  %s1047_s5 = smov (%p38_p12, %s36_s5), 0 }
  0x19   : > { %p933_p5 = por %p892_p2, %p52_p13  ;;  %s40_s9 = ssub.s32 %s821_s16, %s1047_s5 }
  0x1a   : > { %p927_p3 = por %p53_p0, %p52_p13  ;;  %p589_p7 = scmp.lt.s32.totalorder %s825_s17, 2 }
  0x1b   : > { %p43_p9 = scmp.eq.s32.totalorder %s40_s9, 0  ;;  %s171_s10 = sand.u32 1, %s813_s14  }
  0x1c   : > { %s528_s11 = sshll.u32 %s171_s10, 5  ;;  %s545_s19 = sshll.u32 %s821_s16, 5 }
  0x1d   : > { %s942_s18 = scalar_select %p43_p9, %s813_s14, %s45_s6  }
  0x1e   : > { %s183_s26 = scalar_lea.hbm %s1028_s0, %s545_s19  ;;  %s175_s28 = scalar_lea.vmem [#allocation2], %s528_s11 }
  0x1f   : > { %s186_s29 = sshll.u32 %s175_s28, 4  ;;  %s184_s21 = sshll.u32 %s183_s26, 4  ;;  %s187_s29 = int_to_ptr.vmem [resolvable:$true] %s186_s29  ;;  %s185_s21 = int_to_ptr.hbm [resolvable:$true] %s184_s21 }
  0x20   : > { %p578_p2 = pnand %p589_p7, %p927_p3  ;;  %s172_s30 = scalar_lea.sflag [#allocation3], %s171_s10 }
  0x21   : > { %s830_s4 = smov 256   ;;  %s831_s1 = smov 16  }
  0x22   : > { %580 = dma.hbm_to_vmem [thread:$0]  (!%p578_p2), %s185_s21, 512, %s187_s29, %s172_s30, %s830_s4, %s830_s4, %s831_s1  }
  0x23   : > { %198 = sbr.rel (%p911_p8) target bundleno = 229 (0xe5), region = 28  ;;  %s953_s6 = sand.u32 (!%p911_p8), 1, %s809_s13  }
  0x24   : > { %s532_s9 = sshll.u32 (!%p911_p8), %s953_s6, 5  ;;  %s201_s11 = scalar_lea.sflag (!%p911_p8), [#allocation3], %s953_s6 }
  0x25   : > { %s957_s19 = scalar_lea.vmem (!%p911_p8), [#allocation2], %s532_s9 }
  0x28   : > { %788 = dma.done.wait (%p898_p4), %s201_s11, 512  }
  0x29   : > { %790 = vsyncadd (%p898_p4), %s201_s11, 4294966784 }
  0x2a   : > { %792 = dma.done.wait (%p888_p1), [#allocation6], 3456  }
  0x2b   : > { %794 = vsyncadd (%p888_p1), [#allocation6], 4294963840  ;;  %v259_v0 = vld [vmem:[#allocation5 + $0x78] sm:$0xff]  ;;  %v258_v1 = vld [vmem:[#allocation5 + $0x70] sm:$0xff]  ;;  %vm271_vm0 = vcmask 719872   ;;  %s534_s1 = sshll.u32 %s953_s6, 4 }
  0x2c   : > { %278 = vmatpush.msra.mxu0 %v259_v0  ;;  %547 = vmatpush.msra.mxu2 %v259_v0  ;;  %v270_v2 = vld [vmem:[#allocation5 + $0xd0] sm:$0xff]  ;;  %v257_v3 = vld [vmem:[#allocation5 + $0x68] sm:$0xff]  ;;  %v268_v5 = vld [vmem:[#allocation5 + $0xc0] sm:$0xff]  ;;  %s546_s20 = sshll.u32 %s817_s15, 4  ;;  %s230_s10 = scalar_lea.vmem [#allocation7], %s534_s1 }
  0x2d   : > { %306 = vmatpush.msra.mxu1 %v270_v2  ;;  %v269_v4 = vld [vmem:[#allocation5 + $0xc8] sm:$0xff]  ;;  %v256_v6 = vld [vmem:[#allocation5 + $0x60] sm:$0xff]  ;;  %v267_v7 = vld [vmem:[#allocation5 + $0xb8] sm:$0xff]  ;;  %s375_s7 = scalar_lea.hbm %s1030_s2, %s546_s20  ;;  %s376_s24 = sshll.u32 %s230_s10, 4  ;;  %s377_s24 = int_to_ptr.vmem [resolvable:$true] %s376_s24 }
  0x2e   : > { %279 = vmatpush.msra.mxu0 %v258_v1  ;;  %548 = vmatpush.msra.mxu2 %v258_v1  ;;  %v255_v8 = vld [vmem:[#allocation5 + $0x58] sm:$0xff]  ;;  %v266_v9 = vld [vmem:[#allocation5 + $0xb0] sm:$0xff]  ;;  %v265_v11 = vld [vmem:[#allocation5 + $0xa8] sm:$0xff]  ;;  %s378_s25 = sshll.u32 %s375_s7, 4  ;;  %s357_s26 = scalar_lea.sflag [#allocation4], %s953_s6  ;;  %s379_s25 = int_to_ptr.hbm [resolvable:$true] %s378_s25 }
  0x2f   : > { %307 = vmatpush.msra.mxu1 %v269_v4  ;;  %v254_v10 = vld [vmem:[#allocation5 + $0x50] sm:$0xff]  ;;  %v253_v12 = vld [vmem:[#allocation5 + $0x48] sm:$0xff]  ;;  %v264_v13 = vld [vmem:[#allocation5 + $0xa0] sm:$0xff]  ;;  %s721_s28 = sshra.s32 %s379_s25, 4  ;;  %s727_s4 = scalar_lea.hbm %s1030_s2, 32  ;;  %s722_s28 = int_to_ptr.hbm [resolvable:$true] %s721_s28 }
  0x30   : > { %280 = vmatpush.msra.mxu0 %v257_v3  ;;  %549 = vmatpush.msra.mxu2 %v257_v3  ;;  %v252_v14 = vld [vmem:[#allocation5 + $0x40] sm:$0xff]  ;;  %v263_v15 = vld [vmem:[#allocation5 + $0x98] sm:$0xff]  ;;  %v262_v17 = vld [vmem:[#allocation5 + $0x90] sm:$0xff]  ;;  %s723_s29 = scalar_lea.hbm %s722_s28, 16  ;;  %p728_p10 = scmp.lt.s32.totalorder %s722_s28, %s1030_s2 }
  0x31   : > { %308 = vmatpush.msra.mxu1 %v268_v5  ;;  %v251_v16 = vld [vmem:[#allocation5 + $0x38] sm:$0xff]  ;;  %v250_v18 = vld [vmem:[#allocation5 + $0x30] sm:$0xff]  ;;  %v261_v19 = vld [vmem:[#allocation5 + $0x88] sm:$0xff]  ;;  %p724_p1 = scmp.ne.s32.totalorder %s722_s28, %s723_s29  ;;  %p729_p12 = scmp.lt.s32.totalorder %s727_s4, %s723_s29 }
  0x32   : > { %281 = vmatpush.msra.mxu0 %v256_v6  ;;  %550 = vmatpush.msra.mxu2 %v256_v6  ;;  %v249_v20 = vld [vmem:[#allocation5 + $0x28] sm:$0xff]  ;;  %v260_v21 = vld [vmem:[#allocation5 + $0x80] sm:$0xff]  ;;  %v247_v24 = vld [vmem:[#allocation5 + $0x18] sm:$0xff] }
  0x33   : > { %309 = vmatpush.msra.mxu1 %v267_v7  ;;  %v248_v22 = vld [vmem:[#allocation5 + $0x20] sm:$0xff]  ;;  %v241_v23 = vld [vmem:[%s957_s19 + $0x8] sm:$0xff]  ;;  %v246_v25 = vld [vmem:[#allocation5 + $0x10] sm:$0xff]  ;;  %p725_p4 = pnand %p724_p1, %p933_p5  ;;  %p730_p13 = por %p729_p12, %p728_p10 }
  0x34   : > { %282 = vmatpush.msra.mxu0 %v255_v8  ;;  %551 = vmatpush.msra.mxu2 %v255_v8  ;;  %v245_v26 = vld [vmem:[#allocation5 + $0x8] sm:$0xff]  ;;  %v244_v27 = vld [vmem:[#allocation5] sm:$0xff]  ;;  %v242_v29 = vld [vmem:[%s957_s19 + $0x10] sm:$0xff] }
  0x35   : > { %310 = vmatpush.msra.mxu1 %v266_v9  ;;  %v240_v28 = vld [vmem:[%s957_s19] sm:$0xff]  ;;  %v243_v30 = vld [vmem:[%s957_s19 + $0x18] sm:$0xff]  ;;  %p726_p8 = pneg %p725_p4 }
  0x36   : > { %283 = vmatpush.msra.mxu0 %v254_v10  ;;  %552 = vmatpush.msra.mxu2 %v254_v10 }
  0x37   : > { %311 = vmatpush.msra.mxu1 %v265_v11  ;;  %p731_p0 = pnand %p730_p13, %p726_p8 }
  0x38   : > { %284 = vmatpush.msra.mxu0 %v253_v12  ;;  %553 = vmatpush.msra.mxu2 %v253_v12 }
  0x39   : > { %312 = vmatpush.msra.mxu1 %v264_v13 }
  0x3a   : > { %285 = vmatpush.msra.mxu0 %v252_v14  ;;  %554 = vmatpush.msra.mxu2 %v252_v14 }
  0x3b   : > { %313 = vmatpush.msra.mxu1 %v263_v15 }
  0x3c   : > { %286 = vmatpush.msra.mxu0 %v251_v16  ;;  %555 = vmatpush.msra.mxu2 %v251_v16 }
  0x3d   : > { %314 = vmatpush.msra.mxu1 %v262_v17 }
  0x3e   : > { %287 = vmatpush.msra.mxu0 %v250_v18  ;;  %556 = vmatpush.msra.mxu2 %v250_v18 }
  0x3f   : > { %315 = vmatpush.msra.mxu1 %v261_v19 }
  0x40   : > { %288 = vmatpush.msra.mxu0 %v249_v20  ;;  %557 = vmatpush.msra.mxu2 %v249_v20 }
  0x41   : > { %316 = vmatpush.msra.mxu1 %v260_v21 }
  0x42   : > { %289 = vmatpush.msra.mxu0 %v248_v22  ;;  %558 = vmatpush.msra.mxu2 %v248_v22 }
  0x43   : > { %536 = vmatmul.msk.f32.vlgmr.msra.gmra.mxu1 %vm271_vm0, %v241_v23 }
  0x44   : > { %290 = vmatpush.msra.mxu0 %v247_v24  ;;  %559 = vmatpush.msra.mxu2 %v247_v24 }
  0x46   : > { %291 = vmatpush.msra.mxu0 %v246_v25  ;;  %560 = vmatpush.msra.mxu2 %v246_v25 }
  0x48   : > { %292 = vmatpush.msra.mxu0 %v245_v26  ;;  %561 = vmatpush.msra.mxu2 %v245_v26 }
  0x4a   : > { %293 = vmatpush.msra.mxu0 %v244_v27  ;;  %562 = vmatpush.msra.mxu2 %v244_v27 }
  0x4b   : > { %294 = vmatmul.f32.vlgmr.msra.gmra.mxu0 %v240_v28  ;;  %297 = vmatmul.f32.vlgmr.msra.gmra.mxu2 %v242_v29 }
  0x4c   : > { %537 = vmatmul.msk.f32.gmra.mxu1 %vm271_vm0, %v243_v30 }
  0xc0   : > { %v318_v31 = vpop.f32.mrf.mxu1 }
  0xc8   : > { %v295_v32 = vpop.f32.mrf.mxu0 }
  0xc9   : > { %v319_v33 = vadd.f32 %v318_v31, %v295_v32  ;;  %v321_v34 = vpop.f32.mrf.mxu1 }
  0xcb   : > { %324 = vst [vmem:[%s230_s10] sm:$0xff] %v319_v33  ;;  %v333_v37 = vmul.f32 %v319_v33, %v319_v33 }
  0xce   : > { %v298_v35 = vpop.f32.mrf.mxu2 }
  0xcf   : > { %v322_v36 = vadd.f32 %v321_v34, %v298_v35 }
  0xd1   : > { %325 = vst [vmem:[%s230_s10 + $0x8] sm:$0xff] %v322_v36  ;;  %v326_v38 = vadd.f32 %v322_v36, %v319_v33  ;;  %v334_v39 = vmul.f32 %v322_v36, %v322_v36 }
  0xd2   : > { %734 = shalt.err (!%p731_p0)
}
  0xd3   : > { %s832_s19 = smov 128   ;;  %s833_s1 = smov 8   ;;  %v327_v40 = vrot.slane %v326_v38, 4  ;;  %v335_v41 = vadd.f32 %v334_v39, %v333_v37  ;;  %vm342_vm1 = vcmask 1040384  }
  0xd4   : > { %569 = dma.vmem_to_hbm [thread:$0]  (%p933_p5), %s377_s24, 256, %s379_s25, %s357_s26, %s832_s19, %s832_s19, %s833_s1  }
  0xd5   : > { %v328_v42 = vadd.f32 %v327_v40, %v326_v38  ;;  %v336_v43 = vrot.slane %v335_v41, 4  ;;  %s535_s20 = sshll.u32 %s953_s6, 1  ;;  %s542_s22 = sshll.u32 %s817_s15, 1 }
  0xd6   : > { %s391_s10 = scalar_lea.hbm %s1031_s3, %s542_s22  ;;  %s237_s24 = scalar_lea.vmem [#allocation8], %s535_s20 }
  0xd7   : > { %v329_v44 = vrot.slane %v328_v42, 2  ;;  %v337_v45 = vadd.f32 %v336_v43, %v335_v41  ;;  %s393_s25 = sshll.u32 %s237_s24, 4  ;;  %s395_s26 = sshll.u32 %s391_s10, 4  ;;  %s394_s25 = int_to_ptr.vmem [resolvable:$true] %s393_s25  ;;  %s396_s26 = int_to_ptr.hbm [resolvable:$true] %s395_s26 }
  0xd8   : > { %s362_s15 = scalar_lea.sflag [#allocation9], %s953_s6  ;;  %s749_s28 = sshra.s32 %s396_s26, 4  ;;  %s750_s28 = int_to_ptr.hbm [resolvable:$true] %s749_s28 }
  0xd9   : > { %v330_v46 = vadd.f32 %v329_v44, %v328_v42  ;;  %v338_v47 = vrot.slane %v337_v45, 2  ;;  %s751_s29 = scalar_lea.hbm %s750_s28, 2  ;;  %s755_s4 = scalar_lea.hbm %s1031_s3, 4 }
  0xda   : > { %p752_p3 = scmp.ne.s32.totalorder %s750_s28, %s751_s29  ;;  %p756_p2 = scmp.lt.s32.totalorder %s750_s28, %s1031_s3 }
  0xdb   : > { %v331_v48 = vrot.slane %v330_v46, 1  ;;  %v339_v49 = vadd.f32 %v338_v47, %v337_v45  ;;  %p757_p1 = scmp.lt.s32.totalorder %s755_s4, %s751_s29 }
  0xdc   : > { %p753_p7 = pnand %p752_p3, %p933_p5 }
  0xdd   : > { %v340_v50 = vrot.slane %v339_v49, 1  ;;  %v332_v51 = vadd.f32 %v331_v48, %v330_v46  ;;  %p758_p4 = por %p757_p1, %p756_p2 }
  0xde   : > { %p754_p9 = pneg %p753_p7 }
  0xdf   : > { %v341_v52 = vadd.f32 %v340_v50, %v339_v49 }
  0xe0   : > { %p759_p8 = pnand %p758_p4, %p754_p9 }
  0xe1   : > { %v343_v53 = vsel %vm342_vm1, %v332_v51, %v341_v52 }
  0xe2   : > { %348 = vst [vmem:[%s237_s24] sm:$0x3] %v343_v53 }
  0xe3   : > { %762 = shalt.err (!%p759_p8)
}
  0xe4   : > { %570 = dma.vmem_to_hbm [thread:$0]  (%p933_p5), %s394_s25, 32, %s396_s26, %s362_s15  }
  0xe5 PF: > { %s407_s6 = sand.u32 1, %s805_s12   ;;  %p582_p10 = pnand %p527_p11, %p903_p6 }
  0xe6   : > { %s408_s19 = scalar_lea.sflag [#allocation4], %s407_s6 }
  0xe7   : > { %p583_p12 = pneg %p582_p10 }
  0xe9   : > { %796 = dma.done.wait (%p583_p12), %s408_s19, 256  }
  0xea   : > { %798 = vsyncadd (%p583_p12), %s408_s19, 4294967040  ;;  %s418_s1 = scalar_lea.sflag [#allocation9], %s407_s6 }
  0xeb   : > { %800 = dma.done.wait (%p583_p12), %s418_s1, 32  }
  0xec   : > { %802 = vsyncadd (%p583_p12), %s418_s1, 4294967264  ;;  %s24_s17 = sadd.s32 1, %s825_s17   ;;  %s1041_s12 = smov %s809_s13 }
  0xed   : > { %p21_p13 = scmp.ge.s32.totalorder %s24_s17, 4   ;;  %s1042_s13 = smov %s813_s14 }
  0xee   : > { %s1043_s14 = smov %s942_s18  ;;  %s1044_s15 = smov %s821_s16 }
  0xef   : > { %s1045_s16 = smov %s1047_s5  ;;  %23 = sbr.rel (!%p21_p13) target bundleno = 11 (0xb), region = 102 }
  0xf4   :  { %424 = vsyncpa [#allocation3], 1 }
  0xf5   :  { %426 = vsyncpa [#allocation3 + $0x1], 1 }
  0xf6   :  { %427 = vsyncpa [#allocation6], 1 }
  0xf7   :  { %428 = vsyncpa [#allocation4], 1 }
  0xf8   :  { %430 = vsyncpa [#allocation4 + $0x1], 1 }
  0xf9   :  { %431 = vsyncpa [#allocation9], 1 }
  0xfa   :  { %433 = vsyncpa [#allocation9 + $0x1], 1 }

</bundles_post_ra>
